<compile_context>
chip_gen: v7x
topology: tpu7x:2x2x1
jax: 0.10.0
libtpu: 0.0.40
codegen_flags: <defaults>
</compile_context>

<pallas_src>
import functools

import jax
import jax.numpy as jnp
from jax.experimental import pallas as pl
from jax.experimental.pallas import tpu as pltpu

N_T = 700
DROP_PROB = 0.1
BETA1, BETA2 = 1e-4, 0.02


def ddpm_schedules(beta1, beta2, T):
    """Same math as the PyTorch ddpm_schedules, in JAX (glue, runs outside the kernel)."""
    beta_t = (beta2 - beta1) * jnp.arange(0, T + 1, dtype=jnp.float32) / T + beta1
    sqrt_beta_t = jnp.sqrt(beta_t)
    alpha_t = 1.0 - beta_t
    log_alpha_t = jnp.log(alpha_t)
    alphabar_t = jnp.exp(jnp.cumsum(log_alpha_t))
    sqrtab = jnp.sqrt(alphabar_t)
    oneover_sqrta = 1.0 / jnp.sqrt(alpha_t)
    sqrtmab = jnp.sqrt(1.0 - alphabar_t)
    mab_over_sqrtmab = (1.0 - alpha_t) / sqrtmab
    return dict(alpha_t=alpha_t, oneover_sqrta=oneover_sqrta, sqrt_beta_t=sqrt_beta_t,
                alphabar_t=alphabar_t, sqrtab=sqrtab, sqrtmab=sqrtmab,
                mab_over_sqrtmab=mab_over_sqrtmab)


def make_params(C, n_classes=10):
    """Deterministic synthetic nn_model parameters (1x1 conv + time/class embeddings)."""
    kp = jax.random.PRNGKey(42)
    k1, k2, k3, k4 = jax.random.split(kp, 4)
    return {
        "w": 0.2 * jax.random.normal(k1, (C, C), jnp.float32),          # (out_ch, in_ch)
        "bias": 0.1 * jax.random.normal(k2, (C,), jnp.float32),
        "time_w": 0.1 * jax.random.normal(k3, (C,), jnp.float32),
        "class_emb": 0.1 * jax.random.normal(k4, (n_classes, C), jnp.float32),
    }


def _draw_randoms(key, x_shape, c_shape, n_T=N_T, drop_prob=DROP_PROB):
    """Mirrors torch.randint / randn_like / bernoulli in forward()."""
    k_ts, k_noise, k_mask = jax.random.split(key, 3)
    _ts = jax.random.randint(k_ts, (x_shape[0],), 1, n_T + 1)                 # [1, n_T]
    noise = jax.random.normal(k_noise, x_shape, jnp.float32)
    context_mask = jax.random.bernoulli(k_mask, drop_prob, c_shape).astype(jnp.float32)
    return _ts, noise, context_mask


# ---------------------------------------------------------------------------
# Pallas kernel: whole batch as a single lane/sublane-dense (B*C, H*W) slab.
# ---------------------------------------------------------------------------
def ddpm_forward_kernel(x_ref, noise_ref, sab_ref, smab_ref, wbd_ref, emb_ref,
                        loss_ref, *, inv_count):
    # x_ref, noise_ref : VMEM (B*C, P)    P = H*W   (vreg-dense slab)
    # sab_ref, smab_ref: VMEM (B*C, 1)    per-row sqrtab[t_b], sqrtmab[t_b]
    # wbd_ref          : VMEM (B*C, B*C)  block-diagonal 1x1-conv weight kron(I_B, w)
    # emb_ref          : VMEM (B*C, 1)    per-row bias + time emb + masked class emb
    # loss_ref         : SMEM (1,)        scalar MSE loss
    x = x_ref[...]
    n = noise_ref[...]

    # Diffusion forward noising: one fused elementwise pass (lane broadcast of (BC,1)).
    x_t = sab_ref[...] * x + smab_ref[...] * n                       # (BC, P)

    # Synthetic eps predictor: single batched 1x1 conv via block-diagonal MXU matmul,
    # plus one lane-broadcast embedding add.
    pred = jnp.dot(wbd_ref[...], x_t,
                   preferred_element_type=jnp.float32) + emb_ref[...]  # (BC, P)

    # MSE(noise, pred): single cross-lane/sublane reduction, scalar straight to SMEM.
    diff = n - pred
    loss_ref[0] = jnp.sum(diff * diff) * inv_count


# ---------------------------------------------------------------------------
# Wrapper (glue: RNG, schedule gather, layout reshape, embedding / weight prep)
# ---------------------------------------------------------------------------
def ddpm_forward(x_nchw, c, params, sch, key, n_T=N_T, drop_prob=DROP_PROB):
    B, C, H, W = x_nchw.shape
    P = H * W
    BC = B * C
    _ts, noise, context_mask = _draw_randoms(key, x_nchw.shape, c.shape, n_T, drop_prob)

    sab = sch["sqrtab"][_ts].astype(jnp.float32)          # (B,)
    smab = sch["sqrtmab"][_ts].astype(jnp.float32)        # (B,)

    # NCHW -> (B*C, H*W): batch folded into the sublane axis, lane-dense last dim.
    x_slab = x_nchw.reshape(BC, P)
    noise_slab = noise.reshape(BC, P)

    # Per-row scale columns (B*C, 1): each batch scalar repeated across its C channels.
    sab_col = jnp.repeat(sab, C).reshape(BC, 1)
    smab_col = jnp.repeat(smab, C).reshape(BC, 1)

    # Block-diagonal 1x1-conv weight so the whole batch is one MXU call.
    w_bd = jnp.kron(jnp.eye(B, dtype=jnp.float32), params["w"])       # (BC, BC)

    # Per-row embedding fed to the synthetic nn_model:
    #   bias + (t/n_T) * time_w + class_emb[c] * (1 - context_mask)
    t_norm = _ts.astype(jnp.float32) / n_T                             # (B,)
    c_emb = params["class_emb"][c] * (1.0 - context_mask)[:, None]     # (B, C)
    emb = params["bias"][None, :] + t_norm[:, None] * params["time_w"][None, :] + c_emb
    emb_col = emb.reshape(BC, 1).astype(jnp.float32)

    kernel = functools.partial(ddpm_forward_kernel, inv_count=1.0 / float(BC * P))
    loss = pl.pallas_call(
        kernel,
        out_shape=jax.ShapeDtypeStruct((1,), jnp.float32),
        in_specs=[
            pl.BlockSpec(memory_space=pltpu.MemorySpace.VMEM),   # x slab
            pl.BlockSpec(memory_space=pltpu.MemorySpace.VMEM),   # noise slab
            pl.BlockSpec(memory_space=pltpu.MemorySpace.VMEM),   # sab column
            pl.BlockSpec(memory_space=pltpu.MemorySpace.VMEM),   # smab column
            pl.BlockSpec(memory_space=pltpu.MemorySpace.VMEM),   # block-diag weight
            pl.BlockSpec(memory_space=pltpu.MemorySpace.VMEM),   # emb column
        ],
        out_specs=pl.BlockSpec(memory_space=pltpu.MemorySpace.SMEM),   # scalar loss
    )(x_slab, noise_slab, sab_col, smab_col, w_bd, emb_col)
    return loss[0]


# Pure-JAX reference of the same forward (for correctness check)
def ddpm_forward_ref(x_nchw, c, params, sch, key, n_T=N_T, drop_prob=DROP_PROB):
    _ts, noise, context_mask = _draw_randoms(key, x_nchw.shape, c.shape, n_T, drop_prob)
    x_t = (sch["sqrtab"][_ts][:, None, None, None] * x_nchw
           + sch["sqrtmab"][_ts][:, None, None, None] * noise)
    t_norm = _ts.astype(jnp.float32) / n_T
    c_emb = params["class_emb"][c] * (1.0 - context_mask)[:, None]
    emb = params["bias"][None, :] + t_norm[:, None] * params["time_w"][None, :] + c_emb
    pred = jnp.einsum("oc,bchw->bohw", params["w"], x_t) + emb[:, :, None, None]
    return jnp.mean((noise - pred) ** 2)


if __name__ == "__main__":
    key = jax.random.PRNGKey(0)
    kx, kc, kfwd = jax.random.split(key, 3)

    B, C, H, W = 2, 4, 16, 16
    x = jax.random.normal(kx, (B, C, H, W), jnp.float32)
    c = jax.random.randint(kc, (B,), 0, 10)

    sch = ddpm_schedules(BETA1, BETA2, N_T)
    params = make_params(C)

    loss = jax.block_until_ready(ddpm_forward(x, c, params, sch, kfwd))
    ref = jax.block_until_ready(ddpm_forward_ref(x, c, params, sch, kfwd))

    assert jnp.isfinite(loss), loss
    assert jnp.allclose(loss, ref, rtol=1e-5, atol=1e-5), (loss, ref)
    print("KERNEL_OK")
</pallas_src>

<mosaic_0001>
module attributes {stable_mosaic.version = 11 : i64} {
  func.func @ddpm_forward_kernel(%arg0: memref<8x256xf32, #tpu.memory_space<vmem>>, %arg1: memref<8x256xf32, #tpu.memory_space<vmem>>, %arg2: memref<8x1xf32, #tpu.memory_space<vmem>>, %arg3: memref<8x1xf32, #tpu.memory_space<vmem>>, %arg4: memref<8x8xf32, #tpu.memory_space<vmem>>, %arg5: memref<8x1xf32, #tpu.memory_space<vmem>>, %arg6: memref<1xf32, #tpu.memory_space<smem>>) attributes {dimension_semantics = [], scalar_prefetch = 0 : i64, scratch_operands = 0 : i64, tpu.core_type = #tpu.core_type<tc>} {
    %c0 = arith.constant 0 : index
    %c0_0 = arith.constant 0 : index
    %0 = vector.load %arg0[%c0, %c0_0] : memref<8x256xf32, #tpu.memory_space<vmem>>, vector<8x256xf32>
    %c0_1 = arith.constant 0 : index
    %c0_2 = arith.constant 0 : index
    %1 = vector.load %arg1[%c0_1, %c0_2] : memref<8x256xf32, #tpu.memory_space<vmem>>, vector<8x256xf32>
    %c0_3 = arith.constant 0 : index
    %c0_4 = arith.constant 0 : index
    %2 = vector.load %arg2[%c0_3, %c0_4] : memref<8x1xf32, #tpu.memory_space<vmem>>, vector<8x1xf32>
    %3 = vector.broadcast %2 : vector<8x1xf32> to vector<8x256xf32>
    %4 = arith.mulf %3, %0 : vector<8x256xf32>
    %c0_5 = arith.constant 0 : index
    %c0_6 = arith.constant 0 : index
    %5 = vector.load %arg3[%c0_5, %c0_6] : memref<8x1xf32, #tpu.memory_space<vmem>>, vector<8x1xf32>
    %6 = vector.broadcast %5 : vector<8x1xf32> to vector<8x256xf32>
    %7 = arith.mulf %6, %1 : vector<8x256xf32>
    %8 = arith.addf %4, %7 : vector<8x256xf32>
    %c0_7 = arith.constant 0 : index
    %c0_8 = arith.constant 0 : index
    %9 = vector.load %arg4[%c0_7, %c0_8] : memref<8x8xf32, #tpu.memory_space<vmem>>, vector<8x8xf32>
    %cst = arith.constant dense<0.000000e+00> : vector<8x256xf32>
    %10 = tpu.matmul %9, %8, %cst {dimension_numbers = #tpu.dot_dimension_numbers<[1], [0], [0], [1], [0, 0, 1, 1], [], []>} : vector<8x8xf32>, vector<8x256xf32>, vector<8x256xf32> -> vector<8x256xf32>
    %c0_9 = arith.constant 0 : index
    %c0_10 = arith.constant 0 : index
    %11 = vector.load %arg5[%c0_9, %c0_10] : memref<8x1xf32, #tpu.memory_space<vmem>>, vector<8x1xf32>
    %12 = vector.broadcast %11 : vector<8x1xf32> to vector<8x256xf32>
    %13 = arith.addf %10, %12 : vector<8x256xf32>
    %14 = arith.subf %1, %13 : vector<8x256xf32>
    %15 = arith.mulf %14, %14 : vector<8x256xf32>
    %16 = vector.shape_cast %15 : vector<8x256xf32> to vector<1x8x256xf32>
    %cst_11 = arith.constant dense<0.000000e+00> : vector<1xf32>
    %17 = vector.multi_reduction <add>, %16, %cst_11 [1, 2] : vector<1x8x256xf32> to vector<1xf32>
    %18 = vector.shape_cast %17 : vector<1xf32> to vector<1x1x1xf32>
    %19 = vector.extract %18[0, 0, 0] : f32 from vector<1x1x1xf32>
    %cst_12 = arith.constant 4.8828125E-4 : f32
    %20 = arith.mulf %19, %cst_12 : f32
    %c0_13 = arith.constant 0 : index
    %21 = memref.load %arg6[%c0_13] : memref<1xf32, #tpu.memory_space<smem>>
    memref.store %20, %arg6[%c0_13] : memref<1xf32, #tpu.memory_space<smem>>
    return
  }
}

</mosaic_0001>

<bundles_post_ra>
// kernel: tpu_custom_call.1
= control target key start
LH: loop header
LB: loop body
LE: loop exit
PB: predicated region body
PF: predicated region fallthrough
CT: control target
= control target key end

     0   :  { %11 = vsyncpa [#allocation3], 0  ;;  %s297_s0 = inlined_call_operand.vmem [shape: f32[8,256], index: 0, kind: input, shape index: {}]   ;;  %s298_s1 = inlined_call_operand.hbm [shape: f32[8,256], index: 1, kind: input, shape index: {}]   ;;  %s299_s2 = inlined_call_operand.vmem [shape: f32[8,1], index: 2, kind: input, shape index: {}]   ;;  %s300_s3 = inlined_call_operand.vmem [shape: f32[8,1], index: 3, kind: input, shape index: {}]   ;;  %s301_s4 = inlined_call_operand.vmem [shape: f32[8,8], index: 4, kind: input, shape index: {}]   ;;  %s302_s5 = inlined_call_operand.vmem [shape: f32[8,1], index: 5, kind: input, shape index: {}]   ;;  %s303_s6 = inlined_call_operand.hbm [shape: f32[1], index: 6, kind: output, shape index: {}]  }
   0x1   :  { %12 = vsyncpa [#allocation4], 0  ;;  %s216_s21 = smov [#allocation2]   ;;  %s180_s25 = scalar_lea.hbm %s298_s1, 256 }
   0x2   :  { %s21_s22 = sshll.u32 %s216_s21, 4  ;;  %p181_p0 = scmp.ne.s32.totalorder %s298_s1, %s180_s25  ;;  %s22_s22 = int_to_ptr.vmem [resolvable:$true] %s21_s22 }
   0x3   :  { %p184_p1 = scmp.lt.u32.totalorder %s180_s25, %s298_s1 }
   0x5   :  { %p186_p2 = pnand %p184_p1, %p181_p0 }
   0x7   :  { %189 = shalt.err (!%p186_p2)
}
   0x8   :  { %s190_s30 = scalar_lea.vmem %s22_s22, 256  ;;  %p195_p4 = scmp.lt.s32.totalorder %s22_s22, %s22_s22 }
   0x9   :  { %p191_p3 = scmp.ne.s32.totalorder %s22_s22, %s190_s30  ;;  %p196_p5 = scmp.lt.s32.totalorder %s190_s30, %s190_s30 }
   0xb   :  { %p197_p6 = por %p196_p5, %p195_p4 }
   0xd   :  { %p198_p7 = pnand %p197_p6, %p191_p3 }
   0xf   :  { %201 = shalt.err (!%p198_p7)
}
  0x10   :  { %24 = dma.hbm_to_vmem [thread:$0]  %s298_s1, 256, %s22_s22, [#allocation3]  }
  0x11   :  { %212 = dma.done.wait [#allocation3], 256  }
  0x12   :  { %213 = vsyncadd [#allocation3], 4294967040  ;;  %v217_v0 = vmov 0   ;;  %v40_v1 = vld [vmem:[%s299_s2] sm:$0xff]  ;;  %v218_v3 = vmov 0.0   ;;  %v37_v7 = vld [vmem:[%s297_s0 + $0x8] sm:$0xff] }
  0x13   :  { %178 = vset.pattern.permute.xlu0 %v217_v0  ;;  %179 = vset.pattern.permute.xlu1 %v217_v0  ;;  %v48_v2 = vld [vmem:[%s300_s3] sm:$0xff]  ;;  %v39_v9 = vld [vmem:[#allocation2 + $0x8] sm:$0xff]  ;;  %vm65_vm0 = vcmask 64512   ;;  %s202_s19 = scalar_lea.hbm %s303_s6, 16 }
  0x14   :  { %43 = vperm.xlu0 %178, %v40_v1   ;;  %133 = vmatprep.mubr.f32.mxu0 %v218_v3  ;;  %v59_v4 = vld [vmem:[%s302_s5] sm:$0xff]  ;;  %p203_p8 = scmp.ne.s32.totalorder %s303_s6, %s202_s19  ;;  %p206_p9 = scmp.lt.u32.totalorder %s202_s19, %s303_s6 }
  0x15   :  { %62 = vperm.xlu1 %179, %v59_v4   ;;  %v36_v6 = vld [vmem:[%s297_s0] sm:$0xff] }
  0x16   :  { %v38_v8 = vld [vmem:[#allocation2] sm:$0xff]  ;;  %p208_p10 = pnand %p206_p9, %p203_p8 }
  0x17   :  { %v58_v17 = vld [vmem:[%s301_s4] sm:$0xff] }
  0x18   :  { %51 = vperm.xlu0 %178, %v48_v2  }
  0x93   :  { %v44_v5 = vpop.permute.xlu0 %43 }
  0x94   :  { %v46_v11 = vmul.f32 %v44_v5, %v36_v6  ;;  %v47_v12 = vmul.f32 %v44_v5, %v37_v7  ;;  %v63_v18 = vpop.permute.xlu1 %62 }
  0x97   :  { %v52_v10 = vpop.permute.xlu0 %51 }
  0x98   :  { %v54_v13 = vmul.f32 %v52_v10, %v38_v8  ;;  %v55_v14 = vmul.f32 %v52_v10, %v39_v9 }
  0x9a   :  { %v57_v15 = vadd.f32 %v55_v14, %v47_v12  ;;  %v56_v16 = vadd.f32 %v54_v13, %v46_v11 }
  0x9c   :  { %69 = vmatprep.subr.mxu0 %v57_v15 }
  0x9d   :  { %70 = vmatpush1.msra.mxu0 %v56_v16 }
  0x9e   :  { %171 = vmatmul.mubr.msk.f32.vlgmr.msra.gmra.mrb[0].mxu0 %vm65_vm0, %v58_v17 }
 0x171   :  { %v135_v19 = vpop.f32.mrb[0].mxu0 }
 0x172   :  { %v136_v20 = vadd.f32 %v135_v19, %v63_v18  ;;  %v137_v21 = vpop.f32.mrb[1].mxu0 }
 0x173   :  { %v138_v22 = vadd.f32 %v137_v21, %v63_v18 }
 0x174   :  { %v140_v23 = vsub.f32 %v38_v8, %v136_v20 }
 0x175   :  { %v141_v24 = vsub.f32 %v39_v9, %v138_v22 }
 0x176   :  { %v142_v25 = vmul.f32 %v140_v23, %v140_v23 }
 0x177   :  { %v143_v26 = vmul.f32 %v141_v24, %v141_v24 }
 0x179   :  { %v144_v27 = vadd.f32 %v143_v26, %v142_v25 }
 0x17b   :  { %145 = vadd.xlane.f32.xlu1 %v144_v27 }
 0x208   :  { %v146_v28 = vpop.xlane.xlu1 %145 }
 0x209   :  { %v147_v29 = vrot.slane %v146_v28, 4 }
 0x20b   :  { %v148_v30 = vadd.f32 %v147_v29, %v146_v28 }
 0x20d   :  { %v149_v31 = vrot.slane %v148_v30, 2 }
 0x20f   :  { %v150_v32 = vadd.f32 %v149_v31, %v148_v30 }
 0x211   :  { %v151_v33 = vrot.slane %v150_v32, 1 }
 0x213   :  { %v152_v34 = vadd.f32 %v151_v33, %v150_v32 }
 0x215   :  { %172 = vpush %v152_v34 }
 0x246   :  { %s173_s0 = spop %172 }
 0x247   :  { %s154_s4 = smul.f32 0.00048828125, %s173_s0 }
 0x249   :  { %156 = sst [smem:[#allocation5]] %s154_s4 }
 0x24a   :  { %211 = shalt.err (!%p208_p10)
}
 0x24b   :  { %s219_s24 = smov [#allocation5]  }
 0x24c   :  { %164 = dma.smem_to_hbm %s219_s24, 16, %s303_s6, [#allocation4]  }
 0x24d   :  { %214 = dma.done.wait [#allocation4], 16  }
 0x24e   :  { %215 = vsyncadd [#allocation4], 4294967280 }
 0x24f   :  { %168 = sfence }
 0x250   :  { %169 = vsyncpa [#allocation3], 1 }
 0x251   :  { %170 = vsyncpa [#allocation4], 1 }

</bundles_post_ra>
